<compile_context>
chip_gen: v7x
topology: tpu7x:2x2x1
jax: 0.10.0
libtpu: 0.0.40
codegen_flags: <defaults>
</compile_context>

<pallas_src>
import jax
import jax.numpy as jnp
from jax import lax
from jax.experimental import pallas as pl
from jax.experimental.pallas import tpu as pltpu


def _cdiv(a: int, b: int) -> int:
    return -(-a // b)


def _make_mutox_kernel(output_prob: bool):
    def mutox_kernel(x_ref, w1_ref, b1_ref, w2_ref, b2_ref, w3_ref, b3_ref, o_ref):
        # Dropout(p=0.01) is identity at inference.
        # Cast the stored-dtype activation tile to the compute dtype in-kernel
        # (cheap VPU cast) instead of materializing a cast/padded copy in HBM.
        x = x_ref[...].astype(w1_ref.dtype)

        # Layer 1: Linear + ReLU (f32 MXU accumulation, f32 bias).
        h1 = jnp.dot(x, w1_ref[...], preferred_element_type=jnp.float32)
        h1 = jnp.maximum(h1 + b1_ref[...], 0.0)

        # Layer 2: Linear + ReLU.
        h2 = jnp.dot(h1.astype(w2_ref.dtype), w2_ref[...],
                     preferred_element_type=jnp.float32)
        h2 = jnp.maximum(h2 + b2_ref[...], 0.0)

        # Layer 3: D2 -> 1 projection computed as (1, D2) . (tb, D2)^T -> (1, tb)
        # so the result is a lane-dense output row (no (tb, 1) masked-lane
        # stores, no lane-sparse (D2, 1) weight tile).
        out = lax.dot_general(
            w3_ref[...], h2.astype(w3_ref.dtype),
            dimension_numbers=(((1,), (1,)), ((), ())),
            preferred_element_type=jnp.float32)
        out = out + b3_ref[0]

        if output_prob:
            out = jax.nn.sigmoid(out)

        o_ref[...] = out.astype(o_ref.dtype)

    return mutox_kernel


def prepare_mutox_params(w1, b1, w2, b2, w3, b3, compute_dtype=jnp.bfloat16):
    """One-time conversion of PyTorch nn.Linear (out, in) params to kernel layout.

    Do this at model-load time so the per-call forward does no HBM transposes.
    compute_dtype defaults to bf16 on ALL TPU generations (bf16-native MXU,
    half the weight DMA bytes); biases and accumulation stay f32.  Pass
    jnp.float32 for bit-parity with the f32 PyTorch reference.
    """
    w1t = jnp.asarray(w1).T.astype(compute_dtype)                # (D0, D1)
    w2t = jnp.asarray(w2).T.astype(compute_dtype)                # (D1, D2)
    w3r = jnp.asarray(w3).astype(compute_dtype).reshape(1, -1)   # (1, D2) row
    b1r = jnp.asarray(b1, jnp.float32).reshape(1, -1)            # (1, D1)
    b2r = jnp.asarray(b2, jnp.float32).reshape(1, -1)            # (1, D2)
    b3s = jnp.asarray(b3, jnp.float32).reshape(1)                # (1,) SMEM scalar
    return (w1t, b1r, w2t, b2r, w3r, b3s)


def _choose_batch_tile(B: int, tb: int):
    """Pick (tb_eff, grid) for the batch axis.

    - B <= 128: one block equal to the full batch (legal even when B % 8 != 0
      since the block equals the full array dim).
    - B  > 128: tiles are multiples of 128 (lane-dense (1, tb) output blocks);
      grid >= 2 so the 'parallel' axis can be sharded across both v7x
      TensorCores, and the tile is the smallest 128-multiple covering B in
      that many steps (minimizes dead boundary rows).
    """
    if B <= 128:
        return B, 1
    assert tb % 128 == 0, "batch tile must be a multiple of 128"
    n128 = _cdiv(B, 128)
    n_tiles = max(2, _cdiv(B, tb))
    tb_eff = 128 * _cdiv(n128, n_tiles)
    return tb_eff, _cdiv(B, tb_eff)


def _vmem_limit_bytes(tb_eff, D0, D1, D2, x_itemsize, w_itemsize):
    """Footprint estimate with 2x headroom; never request a full v7x TC (64 MiB)."""
    x_buf = 2 * tb_eff * D0 * x_itemsize                 # double-buffered x tile
    w_buf = 2 * (D0 * D1 + D1 * D2 + D2) * w_itemsize    # weights (2 pipeline bufs)
    b_buf = 2 * (D1 + D2 + 1) * 4                        # biases
    o_buf = 2 * tb_eff * 4                               # (1, tb) output row
    inter = tb_eff * (D0 + D1 + D2) * 4                  # in-kernel intermediates
    est = x_buf + w_buf + b_buf + o_buf + inter
    return int(min(max(2 * est + (4 << 20), 16 << 20), 48 << 20))


def mutox_classifier(x, params, *, output_prob: bool = False, tb: int = 512):
    """Pallas forward pass of MutoxClassifier.

    x      : (B, D0) array (f32 or bf16; cast to the param compute dtype in-kernel)
    params : output of prepare_mutox_params(...)
    returns (B, 1) float32 (logits, or probabilities if output_prob)
    """
    w1t, b1r, w2t, b2r, w3r, b3s = params
    B, D0 = x.shape
    D1 = w1t.shape[1]
    D2 = w2t.shape[1]

    tb_eff, grid = _choose_batch_tile(B, tb)

    out_row = pl.pallas_call(
        _make_mutox_kernel(output_prob),
        out_shape=jax.ShapeDtypeStruct((1, B), jnp.float32),
        grid_spec=pltpu.PrefetchScalarGridSpec(
            num_scalar_prefetch=0,
            grid=(grid,),
            in_specs=[
                pl.BlockSpec((tb_eff, D0), lambda i: (i, 0)),       # x tile (stored dtype)
                pl.BlockSpec((D0, D1), lambda i: (0, 0)),           # W1 (resident)
                pl.BlockSpec((1, D1), lambda i: (0, 0)),            # b1
                pl.BlockSpec((D1, D2), lambda i: (0, 0)),           # W2 (resident)
                pl.BlockSpec((1, D2), lambda i: (0, 0)),            # b2
                pl.BlockSpec((1, D2), lambda i: (0, 0)),            # W3 row
                pl.BlockSpec(memory_space=pltpu.MemorySpace.SMEM),  # b3 scalar
            ],
            out_specs=pl.BlockSpec((1, tb_eff), lambda i: (0, i)),  # lane-dense row
        ),
        compiler_params=pltpu.CompilerParams(
            dimension_semantics=("parallel",),   # v7x: shard batch over both TCs
            vmem_limit_bytes=_vmem_limit_bytes(
                tb_eff, D0, D1, D2, x.dtype.itemsize, w1t.dtype.itemsize),
        ),
    )(x, w1t, b1r, w2t, b2r, w3r, b3s)

    # (1, B) lane-dense row -> (B, 1) column; lane j of tile i is batch row
    # i*tb_eff + j, so the flat slice preserves batch order.  Boundary-block
    # garbage lanes are never written (masked OOB stores).
    return out_row[0].reshape(B, 1)


def _reference(x, w1, b1, w2, b2, w3, b3, output_prob):
    p = jax.lax.Precision.HIGHEST
    h1 = jnp.maximum(jnp.dot(x, w1.T, precision=p) + b1, 0.0)
    h2 = jnp.maximum(jnp.dot(h1, w2.T, precision=p) + b2, 0.0)
    out = jnp.dot(h2, w3.T, precision=p) + b3
    if output_prob:
        out = jax.nn.sigmoid(out)
    return out


if __name__ == "__main__":
    # Small shapes mirroring the mutox MLP structure (1024->512->128->1), scaled
    # down: D0=256, D1=128, D2=64, out=1.
    B, D0, D1, D2 = 16, 256, 128, 64

    key = jax.random.PRNGKey(0)
    kx, k1, k2, k3, kb1, kb2, kb3, kx2 = jax.random.split(key, 8)

    x = jax.random.normal(kx, (B, D0), dtype=jnp.float32)
    w1 = jax.random.normal(k1, (D1, D0), dtype=jnp.float32) * (1.0 / D0 ** 0.5)
    b1 = jax.random.normal(kb1, (D1,), dtype=jnp.float32) * 0.1
    w2 = jax.random.normal(k2, (D2, D1), dtype=jnp.float32) * (1.0 / D1 ** 0.5)
    b2 = jax.random.normal(kb2, (D2,), dtype=jnp.float32) * 0.1
    w3 = jax.random.normal(k3, (1, D2), dtype=jnp.float32) * (1.0 / D2 ** 0.5)
    b3 = jax.random.normal(kb3, (1,), dtype=jnp.float32) * 0.1

    # --- f32 params, single tile (B <= 128), sigmoid in-kernel ---
    params_f32 = prepare_mutox_params(w1, b1, w2, b2, w3, b3, jnp.float32)
    probs = jax.block_until_ready(
        mutox_classifier(x, params_f32, output_prob=True))
    ref_probs = _reference(x, w1, b1, w2, b2, w3, b3, True)
    assert probs.shape == (B, 1)
    assert jnp.allclose(probs, ref_probs, atol=1e-3, rtol=1e-3), "f32 prob mismatch"

    # --- f32 params, ragged batch: no padding, grid=2, boundary block masked ---
    B2 = 300
    x2 = jax.random.normal(kx2, (B2, D0), dtype=jnp.float32)
    logits = jax.block_until_ready(
        mutox_classifier(x2, params_f32, output_prob=False))
    ref_logits = _reference(x2, w1, b1, w2, b2, w3, b3, False)
    assert logits.shape == (B2, 1)
    assert jnp.allclose(logits, ref_logits, atol=1e-3, rtol=1e-3), "f32 logit mismatch"

    # --- default bf16 weights / f32 accumulation (all TPU generations) ---
    params_bf16 = prepare_mutox_params(w1, b1, w2, b2, w3, b3)
    probs_bf16 = jax.block_until_ready(
        mutox_classifier(x, params_bf16, output_prob=True))
    assert probs_bf16.shape == (B, 1)
    assert bool(jnp.all(jnp.isfinite(probs_bf16)))
    assert jnp.allclose(probs_bf16, ref_probs, atol=5e-2, rtol=5e-2), "bf16 prob mismatch"

    logits_bf16 = jax.block_until_ready(
        mutox_classifier(x2, params_bf16, output_prob=False))
    assert logits_bf16.shape == (B2, 1)
    assert jnp.allclose(logits_bf16, ref_logits, atol=5e-2, rtol=5e-2), "bf16 logit mismatch"

    print("KERNEL_OK")
</pallas_src>

<mosaic_0001>
module attributes {stable_mosaic.version = 11 : i64} {
  func.func @mutox_kernel(%arg0: i32, %arg1: memref<16x256xf32, #tpu.memory_space<vmem>>, %arg2: memref<256x128xf32, #tpu.memory_space<vmem>>, %arg3: memref<1x128xf32, #tpu.memory_space<vmem>>, %arg4: memref<128x64xf32, #tpu.memory_space<vmem>>, %arg5: memref<1x64xf32, #tpu.memory_space<vmem>>, %arg6: memref<1x64xf32, #tpu.memory_space<vmem>>, %arg7: memref<1xf32, #tpu.memory_space<smem>>, %arg8: memref<1x16xf32, #tpu.memory_space<vmem>>) attributes {dimension_semantics = [#tpu.dimension_semantics<parallel>], iteration_bounds = array<i64: 1>, scalar_prefetch = 0 : i64, scratch_operands = 0 : i64, tpu.core_type = #tpu.core_type<tc>, window_params = [{transform_indices = @transform_0, window_bounds = array<i64: 16, 256>}, {pipeline_mode = #tpu.pipeline_mode<synchronous>, transform_indices = @transform_1, window_bounds = array<i64: 256, 128>}, {pipeline_mode = #tpu.pipeline_mode<synchronous>, transform_indices = @transform_2, window_bounds = array<i64: 1, 128>}, {pipeline_mode = #tpu.pipeline_mode<synchronous>, transform_indices = @transform_3, window_bounds = array<i64: 128, 64>}, {pipeline_mode = #tpu.pipeline_mode<synchronous>, transform_indices = @transform_4, window_bounds = array<i64: 1, 64>}, {pipeline_mode = #tpu.pipeline_mode<synchronous>, transform_indices = @transform_5, window_bounds = array<i64: 1, 64>}, {transform_indices = @transform_6, window_bounds = array<i64: 1>}, {transform_indices = @transform_7, window_bounds = array<i64: 1, 16>}]} {
    %c0 = arith.constant 0 : index
    %c0_0 = arith.constant 0 : index
    %0 = vector.load %arg1[%c0, %c0_0] : memref<16x256xf32, #tpu.memory_space<vmem>>, vector<16x256xf32>
    %c0_1 = arith.constant 0 : index
    %c0_2 = arith.constant 0 : index
    %1 = vector.load %arg2[%c0_1, %c0_2] : memref<256x128xf32, #tpu.memory_space<vmem>>, vector<256x128xf32>
    %cst = arith.constant dense<0.000000e+00> : vector<16x128xf32>
    %2 = tpu.matmul %0, %1, %cst {dimension_numbers = #tpu.dot_dimension_numbers<[1], [0], [0], [1], [0, 0, 1, 1], [], []>} : vector<16x256xf32>, vector<256x128xf32>, vector<16x128xf32> -> vector<16x128xf32>
    %c0_3 = arith.constant 0 : index
    %c0_4 = arith.constant 0 : index
    %3 = vector.load %arg3[%c0_3, %c0_4] : memref<1x128xf32, #tpu.memory_space<vmem>>, vector<1x128xf32>
    %4 = vector.broadcast %3 : vector<1x128xf32> to vector<16x128xf32>
    %5 = arith.addf %2, %4 : vector<16x128xf32>
    %cst_5 = arith.constant 0.000000e+00 : f32
    %6 = vector.broadcast %cst_5 : f32 to vector<16x128xf32>
    %7 = arith.maximumf %5, %6 : vector<16x128xf32>
    %c0_6 = arith.constant 0 : index
    %c0_7 = arith.constant 0 : index
    %8 = vector.load %arg4[%c0_6, %c0_7] : memref<128x64xf32, #tpu.memory_space<vmem>>, vector<128x64xf32>
    %cst_8 = arith.constant dense<0.000000e+00> : vector<16x64xf32>
    %9 = tpu.matmul %7, %8, %cst_8 {dimension_numbers = #tpu.dot_dimension_numbers<[1], [0], [0], [1], [0, 0, 1, 1], [], []>} : vector<16x128xf32>, vector<128x64xf32>, vector<16x64xf32> -> vector<16x64xf32>
    %c0_9 = arith.constant 0 : index
    %c0_10 = arith.constant 0 : index
    %10 = vector.load %arg5[%c0_9, %c0_10] : memref<1x64xf32, #tpu.memory_space<vmem>>, vector<1x64xf32>
    %11 = vector.broadcast %10 : vector<1x64xf32> to vector<16x64xf32>
    %12 = arith.addf %9, %11 : vector<16x64xf32>
    %cst_11 = arith.constant 0.000000e+00 : f32
    %13 = vector.broadcast %cst_11 : f32 to vector<16x64xf32>
    %14 = arith.maximumf %12, %13 : vector<16x64xf32>
    %c0_12 = arith.constant 0 : index
    %c0_13 = arith.constant 0 : index
    %15 = vector.load %arg6[%c0_12, %c0_13] : memref<1x64xf32, #tpu.memory_space<vmem>>, vector<1x64xf32>
    %cst_14 = arith.constant dense<0.000000e+00> : vector<1x16xf32>
    %16 = tpu.matmul %15, %14, %cst_14 {dimension_numbers = #tpu.dot_dimension_numbers<[1], [1], [0], [0], [0, 0, 1, 0], [], []>} : vector<1x64xf32>, vector<16x64xf32>, vector<1x16xf32> -> vector<1x16xf32>
    %c0_15 = arith.constant 0 : index
    %17 = memref.load %arg7[%c0_15] : memref<1xf32, #tpu.memory_space<smem>>
    %18 = vector.broadcast %17 : f32 to vector<1x16xf32>
    %19 = arith.addf %16, %18 : vector<1x16xf32>
    %20 = arith.negf %19 : vector<1x16xf32>
    %21 = math.exp %20 : vector<1x16xf32>
    %cst_16 = arith.constant 1.000000e+00 : f32
    %22 = vector.broadcast %cst_16 : f32 to vector<1x16xf32>
    %23 = arith.addf %22, %21 : vector<1x16xf32>
    %24 = arith.divf %22, %23 : vector<1x16xf32>
    %c0_17 = arith.constant 0 : index
    %c0_18 = arith.constant 0 : index
    %25 = vector.load %arg8[%c0_17, %c0_18] : memref<1x16xf32, #tpu.memory_space<vmem>>, vector<1x16xf32>
    tpu.vector_store %arg8[%c0_17, %c0_18], %24 {strides = array<i32>} : memref<1x16xf32, #tpu.memory_space<vmem>>, vector<1x16xf32>,
    return
  }
  func.func @transform_0(%arg0: i32) -> (i32, i32) {
    %c0_i32 = arith.constant 0 : i32
    %c0_i32_0 = arith.constant 0 : i32
    return %arg0, %c0_i32 : i32, i32
  }
  func.func @transform_1(%arg0: i32) -> (i32, i32) {
    %c0_i32 = arith.constant 0 : i32
    %c0_i32_0 = arith.constant 0 : i32
    %c0_i32_1 = arith.constant 0 : i32
    return %c0_i32, %c0_i32_0 : i32, i32
  }
  func.func @transform_2(%arg0: i32) -> (i32, i32) {
    %c0_i32 = arith.constant 0 : i32
    %c0_i32_0 = arith.constant 0 : i32
    %c0_i32_1 = arith.constant 0 : i32
    return %c0_i32, %c0_i32_0 : i32, i32
  }
  func.func @transform_3(%arg0: i32) -> (i32, i32) {
    %c0_i32 = arith.constant 0 : i32
    %c0_i32_0 = arith.constant 0 : i32
    %c0_i32_1 = arith.constant 0 : i32
    return %c0_i32, %c0_i32_0 : i32, i32
  }
  func.func @transform_4(%arg0: i32) -> (i32, i32) {
    %c0_i32 = arith.constant 0 : i32
    %c0_i32_0 = arith.constant 0 : i32
    %c0_i32_1 = arith.constant 0 : i32
    return %c0_i32, %c0_i32_0 : i32, i32
  }
  func.func @transform_5(%arg0: i32) -> (i32, i32) {
    %c0_i32 = arith.constant 0 : i32
    %c0_i32_0 = arith.constant 0 : i32
    %c0_i32_1 = arith.constant 0 : i32
    return %c0_i32, %c0_i32_0 : i32, i32
  }
  func.func @transform_6(%arg0: i32) -> i32 {
    %c0_i32 = arith.constant 0 : i32
    %c0_i32_0 = arith.constant 0 : i32
    return %c0_i32 : i32
  }
  func.func @transform_7(%arg0: i32) -> (i32, i32) {
    %c0_i32 = arith.constant 0 : i32
    %c0_i32_0 = arith.constant 0 : i32
    return %c0_i32, %arg0 : i32, i32
  }
}

</mosaic_0001>

<bundles_post_ra>
// kernel: tpu_custom_call.1
= control target key start
LH: loop header
LB: loop body
LE: loop exit
PB: predicated region body
PF: predicated region fallthrough
CT: control target
= control target key end

     0   :  { %13 = vsyncpa [#allocation4], 0  ;;  %s745_s0 = inlined_call_operand.vmem [shape: f32[16,256], index: 0, kind: input, shape index: {}]   ;;  %s746_s1 = inlined_call_operand.hbm [shape: f32[256,128], index: 1, kind: input, shape index: {}]   ;;  %s747_s2 = inlined_call_operand.vmem [shape: f32[1,128], index: 2, kind: input, shape index: {}]   ;;  %s748_s3 = inlined_call_operand.vmem [shape: f32[128,64], index: 3, kind: input, shape index: {}]   ;;  %s749_s4 = inlined_call_operand.vmem [shape: f32[1,64], index: 4, kind: input, shape index: {}]   ;;  %s750_s5 = inlined_call_operand.vmem [shape: f32[1,64], index: 5, kind: input, shape index: {}]   ;;  %s751_s6 = inlined_call_operand.<no memory space> [shape: f32[1], index: 6, kind: input, shape index: {}]   ;;  %s752_s7 = inlined_call_operand.hbm [shape: f32[1,16], index: 7, kind: output, shape index: {}]  }
   0x1   :  { %14 = vsyncpa [#allocation5], 0  ;;  %s602_s24 = smov [#allocation3]   ;;  %s554_s28 = scalar_lea.hbm %s746_s1, 4096 }
   0x2   :  { %s22_s25 = sshll.u32 %s602_s24, 4  ;;  %p555_p0 = scmp.ne.s32.totalorder %s746_s1, %s554_s28  ;;  %s23_s25 = int_to_ptr.vmem [resolvable:$true] %s22_s25 }
   0x3   :  { %p558_p1 = scmp.lt.u32.totalorder %s554_s28, %s746_s1 }
   0x5   :  { %p560_p2 = pnand %p558_p1, %p555_p0 }
   0x7   :  { %563 = shalt.err (!%p560_p2)
}
   0x8   :  { %s564_s10 = scalar_lea.vmem %s23_s25, 4096  ;;  %p569_p4 = scmp.lt.s32.totalorder %s23_s25, %s23_s25 }
   0x9   :  { %p565_p3 = scmp.ne.s32.totalorder %s23_s25, %s564_s10  ;;  %p570_p5 = scmp.lt.s32.totalorder %s564_s10, %s564_s10 }
   0xb   :  { %p571_p6 = por %p570_p5, %p569_p4 }
   0xd   :  { %p572_p7 = pnand %p571_p6, %p565_p3 }
   0xf   :  { %575 = shalt.err (!%p572_p7)
}
  0x10   :  { %s603_s11 = smov 128   ;;  %s604_s12 = smov 8  }
  0x11   :  { %28 = dma.hbm_to_vmem [thread:$0]  %s746_s1, 4096, %s23_s25, [#allocation4], %s603_s11, %s603_s11, %s604_s12  }
  0x12   :  { %598 = dma.done.wait [#allocation4], 4096  }
  0x13   :  { %599 = vsyncadd [#allocation4], 4294963200  ;;  %v62_v0 = vld [vmem:[#allocation3 + $0x80] sm:$0xff]  ;;  %v63_v1 = vld [vmem:[#allocation3 + $0x88] sm:$0xff]  ;;  %vm606_vm0 = vmmov 0   ;;  %vm265_vm1 = vcmask 523264  }
  0x14   :  { %v46_v2 = vld [vmem:[#allocation3] sm:$0xff]  ;;  %v475_v3 = vpack.c.bf16 %v63_v1, %v62_v0  ;;  %v47_v4 = vld [vmem:[#allocation3 + $0x8] sm:$0xff]  ;;  %v64_v5 = vld [vmem:[#allocation3 + $0x90] sm:$0xff]  ;;  %vm351_vm3 = vcmask 122880  }
  0x15   :  { %v65_v6 = vld [vmem:[#allocation3 + $0x98] sm:$0xff]  ;;  %v477_v7 = vpack.c.bf16 %v47_v4, %v46_v2  ;;  %v48_v9 = vld [vmem:[#allocation3 + $0x10] sm:$0xff]  ;;  %v66_v11 = vld [vmem:[#allocation3 + $0xa0] sm:$0xff] }
  0x16   :  { %v479_v8 = vpack.c.bf16 %v65_v6, %v64_v5  ;;  %v49_v10 = vld [vmem:[#allocation3 + $0x18] sm:$0xff]  ;;  %476 = vmatprep.subr.bf16.mxu0 %v475_v3  ;;  %v67_v12 = vld [vmem:[#allocation3 + $0xa8] sm:$0xff]  ;;  %v50_v15 = vld [vmem:[#allocation3 + $0x20] sm:$0xff] }
  0x17   :  { %478 = vmatpush3.bf16.msra.mxu0 %v477_v7  ;;  %v481_v13 = vpack.c.bf16 %v49_v10, %v48_v9  ;;  %v483_v14 = vpack.c.bf16 %v67_v12, %v66_v11  ;;  %v51_v16 = vld [vmem:[#allocation3 + $0x28] sm:$0xff]  ;;  %v68_v17 = vld [vmem:[#allocation3 + $0xb0] sm:$0xff]  ;;  %v69_v18 = vld [vmem:[#allocation3 + $0xb8] sm:$0xff] }
  0x18   :  { %480 = vmatprep.subr.bf16.mxu0 %v479_v8  ;;  %v485_v19 = vpack.c.bf16 %v51_v16, %v50_v15  ;;  %v487_v20 = vpack.c.bf16 %v69_v18, %v68_v17  ;;  %v52_v21 = vld [vmem:[#allocation3 + $0x30] sm:$0xff]  ;;  %v53_v22 = vld [vmem:[#allocation3 + $0x38] sm:$0xff]  ;;  %v70_v23 = vld [vmem:[#allocation3 + $0xc0] sm:$0xff] }
  0x19   :  { %v71_v24 = vld [vmem:[#allocation3 + $0xc8] sm:$0xff]  ;;  %v54_v26 = vld [vmem:[#allocation3 + $0x40] sm:$0xff]  ;;  %v489_v27 = vpack.c.bf16 %v53_v22, %v52_v21  ;;  %v164_v30 = vld [vmem:[%s748_s3 + $0x10] sm:$0xff] }
  0x1a   :  { %v43_v25 = vld [vmem:[%s745_s0 + $0x8] sm:$0xff]  ;;  %v162_v28 = vld [vmem:[%s748_s3] sm:$0xff]  ;;  %v491_v31 = vpack.c.bf16 %v71_v24, %v70_v23  ;;  %v72_v33 = vld [vmem:[#allocation3 + $0xd0] sm:$0xff]  ;;  %v605_v23 = vmov 0.0|0.0   ;;  %v607_v24 = vmov 0.0  }
  0x1b   :  { %482 = vmatpush3.bf16.msra.mxu0 %v481_v13  ;;  %149 = vmatprep.mubr.f32.mxu0 %v43_v25  ;;  %v163_v29 = vld [vmem:[%s748_s3 + $0x8] sm:$0xff]  ;;  %v165_v35 = vld [vmem:[%s748_s3 + $0x18] sm:$0xff]  ;;  %v166_v38 = vld [vmem:[%s748_s3 + $0x20] sm:$0xff] }
  0x1c   :  { %484 = vmatprep.subr.bf16.mxu0 %v483_v14  ;;  %v55_v32 = vld [vmem:[#allocation3 + $0x48] sm:$0xff]  ;;  %v507_v34 = vpack.c.bf16 %v163_v29, %v162_v28  ;;  %v73_v36 = vld [vmem:[#allocation3 + $0xd8] sm:$0xff]  ;;  %v511_v37 = vpack.c.bf16 %v165_v35, %v164_v30  ;;  %v56_v42 = vld [vmem:[#allocation3 + $0x50] sm:$0xff] }
  0x1d   :  { %v167_v39 = vld [vmem:[%s748_s3 + $0x28] sm:$0xff]  ;;  %v493_v40 = vpack.c.bf16 %v55_v32, %v54_v26  ;;  %v495_v41 = vpack.c.bf16 %v73_v36, %v72_v33  ;;  %v57_v43 = vld [vmem:[#allocation3 + $0x58] sm:$0xff]  ;;  %v74_v44 = vld [vmem:[#allocation3 + $0xe0] sm:$0xff] }
  0x1e   :  { %508 = vmatprep.subr.bf16.mxu1 %v507_v34  ;;  %v515_v45 = vpack.c.bf16 %v167_v39, %v166_v38  ;;  %v75_v46 = vld [vmem:[#allocation3 + $0xe8] sm:$0xff]  ;;  %v168_v47 = vld [vmem:[%s748_s3 + $0x30] sm:$0xff]  ;;  %v169_v48 = vld [vmem:[%s748_s3 + $0x38] sm:$0xff]  ;;  %v497_v49 = vpack.c.bf16 %v57_v43, %v56_v42 }
  0x1f   :  { %486 = vmatpush3.bf16.msra.mxu0 %v485_v19  ;;  %510 = vmatpush3.bf16.msra.mxu1 %v507_v34  ;;  %v499_v50 = vpack.c.bf16 %v75_v46, %v74_v44  ;;  %v58_v51 = vld [vmem:[#allocation3 + $0x60] sm:$0xff]  ;;  %v59_v52 = vld [vmem:[#allocation3 + $0x68] sm:$0xff]  ;;  %v76_v53 = vld [vmem:[#allocation3 + $0xf0] sm:$0xff]  ;;  %v519_v54 = vpack.c.bf16 %v169_v48, %v168_v47  ;;  %v264_v34 = vstv %s751_s6 }
  0x20   :  { %488 = vmatprep.subr.bf16.mxu0 %v487_v20  ;;  %512 = vmatprep.subr.bf16.mxu1 %v511_v37  ;;  %v77_v55 = vld [vmem:[#allocation3 + $0xf8] sm:$0xff]  ;;  %v170_v56 = vld [vmem:[%s748_s3 + $0x40] sm:$0xff]  ;;  %v171_v57 = vld [vmem:[%s748_s3 + $0x48] sm:$0xff]  ;;  %v501_v58 = vpack.c.bf16 %v59_v52, %v58_v51 }
  0x21   :  { %v503_v59 = vpack.c.bf16 %v77_v55, %v76_v53  ;;  %v60_v60 = vld [vmem:[#allocation3 + $0x70] sm:$0xff]  ;;  %v61_v61 = vld [vmem:[#allocation3 + $0x78] sm:$0xff]  ;;  %v523_v62 = vpack.c.bf16 %v171_v57, %v170_v56  ;;  %v42_v0 = vld [vmem:[%s745_s0] sm:$0xff] }
  0x22   :  { %v505_v63 = vpack.c.bf16 %v61_v61, %v60_v60  ;;  %v45_v1 = vld [vmem:[%s745_s0 + $0x18] sm:$0xff]  ;;  %v44_v2 = vld [vmem:[%s745_s0 + $0x10] sm:$0xff]  ;;  %v174_v6 = vld [vmem:[%s748_s3 + $0x60] sm:$0xff] }
  0x23   :  { %490 = vmatpush3.bf16.msra.mxu0 %v489_v27  ;;  %514 = vmatpush3.bf16.msra.mxu1 %v511_v37  ;;  %v172_v3 = vld [vmem:[%s748_s3 + $0x50] sm:$0xff]  ;;  %v173_v4 = vld [vmem:[%s748_s3 + $0x58] sm:$0xff]  ;;  %v175_v7 = vld [vmem:[%s748_s3 + $0x68] sm:$0xff] }
  0x24   :  { %492 = vmatprep.subr.bf16.mxu0 %v491_v31  ;;  %516 = vmatprep.subr.bf16.mxu1 %v515_v45  ;;  %v527_v5 = vpack.c.bf16 %v173_v4, %v172_v3  ;;  %v531_v8 = vpack.c.bf16 %v175_v7, %v174_v6  ;;  %v176_v9 = vld [vmem:[%s748_s3 + $0x70] sm:$0xff]  ;;  %v177_v10 = vld [vmem:[%s748_s3 + $0x78] sm:$0xff]  ;;  %v368_v14 = vld [vmem:[%s747_s2] ss:$0 sm:$0xff] }
  0x25   :  { %v535_v11 = vpack.c.bf16 %v177_v10, %v176_v9  ;;  %v369_v25 = vld [vmem:[%s749_s4] ss:$0 sm:$0xff]  ;;  %vm541_vm2 = vmpackc.low %vm265_vm1, %vm265_vm1  ;;  %s608_s4 = smov [#allocation6]  }
  0x26   :  { %v262_v33 = vld [vmem:[%s750_s5] sm:$0x1]  ;;  %s359_s12 = sshll.u32 %s608_s4, 4  ;;  %s360_s12 = int_to_ptr.vmem [resolvable:$true] %s359_s12 }
  0x27   :  { %494 = vmatpush3.bf16.msra.mxu0 %v493_v40  ;;  %518 = vmatpush3.bf16.msra.mxu1 %v515_v45  ;;  %s576_s5 = scalar_lea.vmem %s360_s12, 16  ;;  %s580_s13 = scalar_lea.vmem %s360_s12, 32 }
  0x28   :  { %496 = vmatprep.subr.bf16.mxu0 %v495_v41  ;;  %520 = vmatprep.subr.bf16.mxu1 %v519_v54  ;;  %p577_p8 = scmp.ne.s32.totalorder %s360_s12, %s576_s5  ;;  %p581_p9 = scmp.lt.s32.totalorder %s360_s12, %s360_s12 }
  0x29   :  { %p582_p10 = scmp.lt.s32.totalorder %s580_s13, %s576_s5 }
  0x2b   :  { %498 = vmatpush3.bf16.msra.mxu0 %v497_v49  ;;  %522 = vmatpush3.bf16.msra.mxu1 %v519_v54  ;;  %p583_p11 = por %p582_p10, %p581_p9 }
  0x2c   :  { %500 = vmatprep.subr.bf16.mxu0 %v499_v50  ;;  %524 = vmatprep.subr.bf16.mxu1 %v523_v62 }
  0x2d   :  { %p584_p12 = pnand %p583_p11, %p577_p8 }
  0x2f   :  { %502 = vmatpush3.bf16.msra.mxu0 %v501_v58  ;;  %526 = vmatpush3.bf16.msra.mxu1 %v523_v62 }
  0x30   :  { %504 = vmatprep.subr.bf16.mxu0 %v503_v59  ;;  %528 = vmatprep.subr.bf16.mxu1 %v527_v5 }
  0x33   :  { %506 = vmatpush3.bf16.msra.mxu0 %v505_v63  ;;  %530 = vmatpush3.bf16.msra.mxu1 %v527_v5 }
  0x34   :  { %532 = vmatprep.subr.bf16.mxu1 %v531_v8  ;;  %539 = vmatprep.subr.bf16.mxu0 %v605_v23 }
  0x36   :  { %150 = vmatmul.mubr.f32.vlgmr.msra.gmra.mrb[0].mxu0 %v42_v0 }
  0x37   :  { %154 = vmatprep.mubr.f32.mxu0 %v45_v1  ;;  %534 = vmatpush3.bf16.msra.mxu1 %v531_v8 }
  0x38   :  { %536 = vmatprep.subr.bf16.mxu1 %v535_v11 }
  0x3a   :  { %155 = vmatmul.mubr.f32.gmra.mrb[2].mxu0 %v44_v2 }
  0x3b   :  { %538 = vmatpush3.bf16.msra.mxu1 %v535_v11  ;;  %472 = vmatprep.mubr.msk.f32.mxu0 %vm606_vm0, %v607_v24 }
 0x109   :  { %v406_v12 = vpop.f32.mrb[0].mxu0 }
 0x10a   :  { %v407_v13 = vpop.f32.mrb[1].mxu0 }
 0x10b   :  { %v408_v15 = vadd.f32 %v407_v13, %v406_v12 }
 0x10d   :  { %v409_v16 = vpop.f32.mrb[2].mxu0  ;;  %v152_v17 = vadd.f32 %v408_v15, %v368_v14 }
 0x10e   :  { %v410_v18 = vpop.f32.mrb[3].mxu0 }
 0x10f   :  { %v411_v19 = vadd.f32 %v410_v18, %v409_v16  ;;  %v160_v20 = vmax.f32 %v152_v17, 0.0 }
 0x111   :  { %v157_v21 = vadd.f32 %v411_v19, %v368_v14  ;;  %465 = vmatprep.mubr.f32.mxu1 %v160_v20 }
 0x113   :  { %v161_v22 = vmax.f32 %v157_v21, 0.0 }
 0x115   :  { %466 = vmatmul.mubr.f32.vlgmr.msra.gmra.mrb[0].mxu1 %v161_v22 }
 0x1e8   :  { %v467_v26 = vpop.f32.mrb[0].mxu1 }
 0x1e9   :  { %v257_v27 = vadd.f32 %v467_v26, %v369_v25  ;;  %v251_v28 = vpop.f32.mrb[1].mxu1 }
 0x1ea   :  { %v252_v29 = vadd.f32 %v369_v25, %v251_v28 }
 0x1eb   :  { %v261_v30 = vmax.f32 %v257_v27, 0.0 }
 0x1ec   :  { %v260_v31 = vmax.f32 %v252_v29, 0.0 }
 0x1ee   :  { %v540_v32 = vpack.c.bf16 %v261_v30, %v260_v31 }
 0x1f0   :  { %542 = vmatpush3.bf16.xpose.msk.msra.mxu0 %vm541_vm2, %v540_v32 }
 0x1f7   :  { %473 = vmatmul.mubr.msk.f32.vlgmr.msra.gmra.mrb[4].mxu0 %vm265_vm1, %v262_v33 }
 0x2ca   :  { %v341_v35 = vpop.f32.mrb[4].mxu0 }
 0x2cb   :  { %v342_v36 = vadd.f32 %v341_v35, %v264_v34  ;;  %v474_v37 = vpop.f32.mrb[5].mxu0 }
 0x2cd   :  { %v373_v38 = vmul.f32 -1.442695, %v342_v36 }
 0x2cf   :  { %550 = vpow2.f32 %v373_v38 }
 0x2d9   :  { %v551_v39 = vpop.eup %550 }
 0x2da   :  { %v348_v40 = vadd.f32 1.0, %v551_v39 }
 0x2dc   :  { %552 = vrcp.f32 %v348_v40 }
 0x2e6   :  { %v553_v41 = vpop.eup %552 }
 0x2e7   :  { %352 = vst.msk [vmem:[#allocation6] sm:$0x1] %vm351_vm3, %v553_v41 }
 0x2e8   :  { %587 = shalt.err (!%p584_p12)
}
 0x2e9   :  { %s588_s1 = scalar_lea.hbm %s752_s7, 16 }
 0x2ea   :  { %p589_p13 = scmp.ne.s32.totalorder %s752_s7, %s588_s1  ;;  %p592_p0 = scmp.lt.u32.totalorder %s588_s1, %s752_s7 }
 0x2ec   :  { %p594_p1 = pnand %p592_p0, %p589_p13 }
 0x2ee   :  { %597 = shalt.err (!%p594_p1)
}
 0x2ef   :  { %362 = dma.vmem_to_hbm [thread:$0]  %s360_s12, 16, %s752_s7, [#allocation5]  }
 0x2f0   :  { %600 = dma.done.wait [#allocation5], 16  }
 0x2f1   :  { %601 = vsyncadd [#allocation5], 4294967280 }
 0x2f2   :  { %366 = vsyncpa [#allocation4], 1 }
 0x2f3   :  { %367 = vsyncpa [#allocation5], 1 }

</bundles_post_ra>
